<compile_context>
chip_gen: v7x
topology: tpu7x:2x2x1
jax: 0.10.0
libtpu: 0.0.40
codegen_flags: <defaults>
</compile_context>

<pallas_src>
import functools

import jax
import jax.numpy as jnp
from jax.experimental import pallas as pl
from jax.experimental.pallas import tpu as pltpu


def _sigmoid_mul_kernel(gate_ref, x_ref, o_ref, *, block_rows):
    # gate_ref: (NC, 1) resident column; x_ref/o_ref: (block_rows, HW) tiles.
    start = pl.multiple_of(pl.program_id(0) * block_rows, 8)
    g = gate_ref[pl.ds(start, block_rows), :]                  # (block_rows, 1)
    g = jax.nn.sigmoid(g.astype(jnp.float32)).astype(x_ref.dtype)
    o_ref[...] = (g * x_ref[...]).astype(o_ref.dtype)          # lane broadcast


def _pick_block_rows(nc, max_rows=256):
    """Largest divisor of nc that is a multiple of 8 and <= max_rows, preferring
    an even number (>= 2) of grid steps (v7x megacore)."""
    candidates = [b for b in range(8, nc, 8) if nc % b == 0 and b <= max_rows]
    best_odd = None
    for b in sorted(candidates, reverse=True):
        steps = nc // b
        if steps < 2:
            continue
        if steps % 2 == 0:
            return b
        if best_odd is None:
            best_odd = b
    if best_odd is not None:
        return best_odd
    return nc  # fall back to a single full-slab step (still correct)


def sigmoid_mul(gate_nchw, x_nchw):
    """Computes sigmoid(gate) * x with gate shape (N, C, 1, 1), x shape (N, C, H, W)."""
    n, c, h, w = x_nchw.shape
    assert gate_nchw.shape == (n, c, 1, 1)
    nc, hw = n * c, h * w

    x2d = x_nchw.reshape(nc, hw)
    g2d = gate_nchw.reshape(nc, 1)

    block_rows = _pick_block_rows(nc)
    grid = (nc // block_rows,)

    out2d = pl.pallas_call(
        functools.partial(_sigmoid_mul_kernel, block_rows=block_rows),
        out_shape=jax.ShapeDtypeStruct((nc, hw), x_nchw.dtype),
        grid_spec=pltpu.PrefetchScalarGridSpec(
            num_scalar_prefetch=0,
            grid=grid,
            in_specs=[
                # Gate: full column, constant block index -> DMA'd once, resident.
                pl.BlockSpec((nc, 1), lambda i: (0, 0)),
                # x: tiled over the NC (sublane) axis, auto double-buffered.
                pl.BlockSpec((block_rows, hw), lambda i: (i, 0)),
            ],
            out_specs=pl.BlockSpec((block_rows, hw), lambda i: (i, 0)),
        ),
        compiler_params=pltpu.CompilerParams(
            dimension_semantics=("parallel",),
        ),
    )(g2d, x2d)

    return out2d.reshape(n, c, h, w)


if __name__ == "__main__":
    key = jax.random.PRNGKey(0)
    k1, k2 = jax.random.split(key)

    # Shapes from the PyTorch module: x207 (1,576,14,14), x211 (1,576,1,1)
    x207 = jax.random.normal(k1, (1, 576, 14, 14), dtype=jnp.float32)
    x211 = jax.random.normal(k2, (1, 576, 1, 1), dtype=jnp.float32)

    out = sigmoid_mul(x211, x207)
    out = jax.block_until_ready(out)

    # Reference check in plain JAX
    ref = jax.nn.sigmoid(x211) * x207
    assert out.shape == (1, 576, 14, 14)
    assert jnp.allclose(out, ref, atol=1e-6, rtol=1e-6)

    print("KERNEL_OK")
</pallas_src>

<mosaic_0001>
module attributes {stable_mosaic.version = 11 : i64} {
  func.func @_sigmoid_mul_kernel(%arg0: i32, %arg1: memref<576x1xf32, #tpu.memory_space<vmem>>, %arg2: memref<144x196xf32, #tpu.memory_space<vmem>>, %arg3: memref<144x196xf32, #tpu.memory_space<vmem>>) attributes {dimension_semantics = [#tpu.dimension_semantics<parallel>], iteration_bounds = array<i64: 4>, scalar_prefetch = 0 : i64, scratch_operands = 0 : i64, tpu.core_type = #tpu.core_type<tc>, window_params = [{pipeline_mode = #tpu.pipeline_mode<synchronous>, transform_indices = @transform_0, window_bounds = array<i64: 576, 1>}, {transform_indices = @transform_1, window_bounds = array<i64: 144, 196>}, {transform_indices = @transform_2, window_bounds = array<i64: 144, 196>}]} {
    %c144_i32 = arith.constant 144 : i32
    %0 = arith.muli %arg0, %c144_i32 : i32
    %1 = tpu.assume_multiple %0, 8 : i32
    %2 = arith.index_cast %1 : i32 to index
    %c0 = arith.constant 0 : index
    %3 = vector.load %arg1[%2, %c0] : memref<576x1xf32, #tpu.memory_space<vmem>>, vector<144x1xf32>
    %4 = arith.negf %3 : vector<144x1xf32>
    %5 = math.exp %4 : vector<144x1xf32>
    %cst = arith.constant 1.000000e+00 : f32
    %6 = vector.broadcast %cst : f32 to vector<144x1xf32>
    %7 = arith.addf %6, %5 : vector<144x1xf32>
    %8 = arith.divf %6, %7 : vector<144x1xf32>
    %c0_0 = arith.constant 0 : index
    %c0_1 = arith.constant 0 : index
    %9 = vector.load %arg2[%c0_0, %c0_1] : memref<144x196xf32, #tpu.memory_space<vmem>>, vector<144x196xf32>
    %10 = vector.broadcast %8 : vector<144x1xf32> to vector<144x196xf32>
    %11 = arith.mulf %10, %9 : vector<144x196xf32>
    %c0_2 = arith.constant 0 : index
    %c0_3 = arith.constant 0 : index
    %12 = vector.load %arg3[%c0_2, %c0_3] : memref<144x196xf32, #tpu.memory_space<vmem>>, vector<144x196xf32>
    tpu.vector_store %arg3[%c0_2, %c0_3], %11 {strides = array<i32>} : memref<144x196xf32, #tpu.memory_space<vmem>>, vector<144x196xf32>,
    return
  }
  func.func @transform_0(%arg0: i32) -> (i32, i32) {
    %c0_i32 = arith.constant 0 : i32
    %c0_i32_0 = arith.constant 0 : i32
    %c0_i32_1 = arith.constant 0 : i32
    return %c0_i32, %c0_i32_0 : i32, i32
  }
  func.func @transform_1(%arg0: i32) -> (i32, i32) {
    %c0_i32 = arith.constant 0 : i32
    %c0_i32_0 = arith.constant 0 : i32
    return %arg0, %c0_i32 : i32, i32
  }
  func.func @transform_2(%arg0: i32) -> (i32, i32) {
    %c0_i32 = arith.constant 0 : i32
    %c0_i32_0 = arith.constant 0 : i32
    return %arg0, %c0_i32 : i32, i32
  }
}

</mosaic_0001>

<bundles_post_ra>
// kernel: tpu_custom_call.1
= control target key start
LH: loop header
LB: loop body
LE: loop exit
PB: predicated region body
PF: predicated region fallthrough
CT: control target
= control target key end

     0   :  { %s677_s9 = smov 0   ;;  %s815_s0 = inlined_call_operand.vmem [shape: f32[576,1], index: 0, kind: input, shape index: {}]   ;;  %s816_s1 = inlined_call_operand.vmem [shape: f32[576,196], index: 1, kind: input, shape index: {}]   ;;  %s817_s2 = inlined_call_operand.vmem [shape: f32[576,196], index: 2, kind: output, shape index: {}]  }
   0x1 LB: > { %s539_s10 = sadd.s32 4294967295, %s659_s9   ;;  %p543_p0 = scmp.ge.s32.totalorder %s659_s9, 1  ;;  %s659_s9 = sphi %s677_s9, %s12_s9  }
   0x2   : > { %p114_p1 = scmp.lt.s32.totalorder %s659_s9, 5 }
   0x4   : > { %p115_p2 = pnand %p543_p0, %p114_p1 }
   0x5   : > { %s152_s11 = smul.u32 (!%p115_p2), 144, %s539_s10  ;;  %v661_v0 = vmov (!%p115_p2), 0   ;;  %vm443_vm0 = vcmask (!%p115_p2), 556032  }
   0x6   : > { %118 = sbr.rel (%p115_p2) target bundleno = 199 (0xc7), region = 28  ;;  %580 = vset.pattern.permute.xlu1 (!%p115_p2), %v661_v0  ;;  %579 = vset.pattern.permute.xlu0 (!%p115_p2), %v661_v0 }
   0x7   : > { %s690_s14 = scalar_lea.vmem (!%p115_p2), %s815_s0, %s152_s11  ;;  %s138_s15 = smul.u32 (!%p115_p2), 18, %s539_s10 }
   0x8   : > { %v156_v1 = vld [vmem:[%s690_s14 + $0x10] sm:$0xff] (!%p115_p2)  ;;  %v154_v2 = vld [vmem:[%s690_s14] sm:$0xff] (!%p115_p2)  ;;  %v157_v3 = vld [vmem:[%s690_s14 + $0x18] sm:$0xff] (!%p115_p2) }
   0x9   : > { %v550_v4 = vmul.f32 (!%p115_p2), -1.442695, %v156_v1  ;;  %v548_v5 = vmul.f32 (!%p115_p2), -1.442695, %v154_v2  ;;  %v551_v6 = vmul.f32 (!%p115_p2), -1.442695, %v157_v3 }
   0xa   : > { %v155_v7 = vld [vmem:[%s690_s14 + $0x8] sm:$0xff] (!%p115_p2)  ;;  %v158_v9 = vld [vmem:[%s690_s14 + $0x20] sm:$0xff] (!%p115_p2)  ;;  %v161_v13 = vld [vmem:[%s690_s14 + $0x38] sm:$0xff] (!%p115_p2)  ;;  %p139_p3 = scmp.lt.s32.totalorder (!%p115_p2), %s138_s15, 71 }
   0xb   : > { %v159_v8 = vld [vmem:[%s690_s14 + $0x28] sm:$0xff] (!%p115_p2)  ;;  %581 = vpow2.f32 (!%p115_p2), %v550_v4  ;;  %v549_v10 = vmul.f32 (!%p115_p2), -1.442695, %v155_v7  ;;  %v552_v12 = vmul.f32 (!%p115_p2), -1.442695, %v158_v9  ;;  %v160_v14 = vld [vmem:[%s690_s14 + $0x30] sm:$0xff] (!%p115_p2) }
   0xc   : > { %v553_v11 = vmul.f32 (!%p115_p2), -1.442695, %v159_v8  ;;  %583 = vpow2.f32 (!%p115_p2), %v548_v5  ;;  %v163_v15 = vld [vmem:[%s690_s14 + $0x48] sm:$0xff] (!%p115_p2)  ;;  %v555_v16 = vmul.f32 (!%p115_p2), -1.442695, %v161_v13  ;;  %v162_v18 = vld [vmem:[%s690_s14 + $0x40] sm:$0xff] (!%p115_p2) }
   0xd   : > { %585 = vpow2.f32 %v551_v6  ;;  %v554_v17 = vmul.f32 -1.442695, %v160_v14  ;;  %v557_v19 = vmul.f32 -1.442695, %v163_v15  ;;  %v165_v20 = vld [vmem:[%s690_s14 + $0x58] sm:$0xff]  ;;  %v164_v22 = vld [vmem:[%s690_s14 + $0x50] sm:$0xff] }
   0xe   : > { %587 = vpow2.f32 %v549_v10  ;;  %v556_v21 = vmul.f32 -1.442695, %v162_v18  ;;  %v559_v23 = vmul.f32 -1.442695, %v165_v20  ;;  %v558_v24 = vmul.f32 -1.442695, %v164_v22 }
   0xf   : > { %589 = vpow2.f32 %v553_v11  ;;  %v167_v28 = vld [vmem:[%s690_s14 + $0x68] sm:$0xff]  ;;  %v166_v45 = vld [vmem:[%s690_s14 + $0x60] sm:$0xff]  ;;  %v169_v47 = vld [vmem:[%s690_s14 + $0x78] sm:$0xff]  ;;  %s819_s15 = smov (!%p139_p3, %s138_s15), 71 }
  0x10   : > { %591 = vpow2.f32 %v552_v12  ;;  %v561_v35 = vmul.f32 -1.442695, %v167_v28  ;;  %v168_v50 = vld [vmem:[%s690_s14 + $0x70] sm:$0xff]  ;;  %v560_v52 = vmul.f32 -1.442695, %v166_v45  ;;  %v171_v53 = vld [vmem:[%s690_s14 + $0x88] sm:$0xff] }
  0x11   : > { %593 = vpow2.f32 %v555_v16  ;;  %v563_v55 = vmul.f32 -1.442695, %v169_v47  ;;  %v170_v56 = vld [vmem:[%s690_s14 + $0x80] sm:$0xff]  ;;  %v562_v58 = vmul.f32 -1.442695, %v168_v50  ;;  %s568_s16 = sshll.u32 %s819_s15, 4 }
  0x12   : > { %595 = vpow2.f32 %v554_v17  ;;  %v565_v60 = vmul.f32 -1.442695, %v171_v53  ;;  %v564_v62 = vmul.f32 -1.442695, %v170_v56  ;;  %s715_s19 = scalar_lea.vmem %s816_s1, %s568_s16  ;;  %s724_s22 = scalar_lea.vmem %s817_s2, %s568_s16 }
  0x13   : > { %597 = vpow2.f32 %v557_v19  ;;  %v285_v28 = vld [vmem:[%s715_s19 + $0x28] sm:$0xff]  ;;  %v290_v47 = vld [vmem:[%s715_s19 + $0x50] sm:$0xff] }
  0x14   : > { %599 = vpow2.f32 %v556_v21  ;;  %v289_v50 = vld [vmem:[%s715_s19 + $0x48] sm:$0xff] }
  0x15   : > { %v582_v25 = vpop.eup %581  ;;  %601 = vpow2.f32 %v559_v23 }
  0x16   : > { %v584_v26 = vpop.eup %583  ;;  %v228_v27 = vadd.f32 1.0, %v582_v25  ;;  %603 = vpow2.f32 %v558_v24 }
  0x17   : > { %v586_v29 = vpop.eup %585  ;;  %v226_v30 = vadd.f32 1.0, %v584_v26 }
  0x18   : > { %v588_v31 = vpop.eup %587  ;;  %605 = vrcp.f32 %v228_v27  ;;  %v229_v32 = vadd.f32 1.0, %v586_v29  ;;  %v284_v27 = vld [vmem:[%s715_s19 + $0x20] sm:$0xff] }
  0x19   : > { %v590_v33 = vpop.eup %589  ;;  %607 = vrcp.f32 %v226_v30  ;;  %v227_v34 = vadd.f32 1.0, %v588_v31  ;;  %v280_v29 = vld [vmem:[%s715_s19] sm:$0xff]  ;;  %v281_v30 = vld [vmem:[%s715_s19 + $0x8] sm:$0xff] }
  0x1a   : > { %v592_v36 = vpop.eup %591  ;;  %609 = vrcp.f32 %v229_v32  ;;  %v231_v37 = vadd.f32 1.0, %v590_v33 }
  0x1b   : > { %v594_v38 = vpop.eup %593  ;;  %611 = vrcp.f32 %v227_v34  ;;  %v230_v39 = vadd.f32 1.0, %v592_v36 }
  0x1c   : > { %v596_v40 = vpop.eup %595  ;;  %v233_v42 = vadd.f32 1.0, %v594_v38  ;;  %613 = vpow2.f32 %v561_v35  ;;  %v287_v38 = vld [vmem:[%s715_s19 + $0x38] sm:$0xff] }
  0x1d   : > { %v598_v41 = vpop.eup %597  ;;  %615 = vrcp.f32 %v231_v37  ;;  %v232_v44 = vadd.f32 1.0, %v596_v40  ;;  %v286_v37 = vld [vmem:[%s715_s19 + $0x30] sm:$0xff]  ;;  %v283_v40 = vld [vmem:[%s715_s19 + $0x18] sm:$0xff] }
  0x1e   : > { %v600_v43 = vpop.eup %599  ;;  %617 = vrcp.f32 %v230_v39  ;;  %v235_v46 = vadd.f32 1.0, %v598_v41  ;;  %v282_v39 = vld [vmem:[%s715_s19 + $0x10] sm:$0xff] }
  0x1f   : > { %v602_v48 = vpop.eup %601  ;;  %v234_v49 = vadd.f32 1.0, %v600_v43  ;;  %619 = vrcp.f32 %v233_v42 }
  0x20   : > { %v604_v51 = vpop.eup %603  ;;  %621 = vrcp.f32 %v232_v44  ;;  %v237_v63 = vadd.f32 1.0, %v602_v48  ;;  %v291_v48 = vld [vmem:[%s715_s19 + $0x58] sm:$0xff] }
  0x21   : > { %623 = vrcp.f32 %v235_v46  ;;  %v236_v1 = vadd.f32 1.0, %v604_v51 }
  0x22   : > { %v606_v54 = vpop.eup %605  ;;  %625 = vrcp.f32 %v234_v49  ;;  %v288_v49 = vld [vmem:[%s715_s19 + $0x40] sm:$0xff] }
  0x23   : > { %v608_v57 = vpop.eup %607  ;;  %328 = vperm.xlu1 %580, %v606_v54   ;;  %627 = vpow2.f32 %v560_v52 }
  0x24   : > { %v610_v59 = vpop.eup %609  ;;  %318 = vperm.xlu0 %579, %v608_v57   ;;  %629 = vpow2.f32 %v563_v55  ;;  %v294_v57 = vld [vmem:[%s715_s19 + $0x70] sm:$0xff] }
  0x25   : > { %v612_v61 = vpop.eup %611  ;;  %631 = vpow2.f32 %v562_v58  ;;  %v295_v58 = vld [vmem:[%s715_s19 + $0x78] sm:$0xff] }
  0x26   : > { %v614_v0 = vpop.eup %613  ;;  %633 = vpow2.f32 %v565_v60  ;;  %v293_v60 = vld [vmem:[%s715_s19 + $0x68] sm:$0xff] }
  0x27   : > { %333 = vperm.xlu1 %580, %v610_v59   ;;  %v616_v2 = vpop.eup %615  ;;  %635 = vpow2.f32 %v564_v62  ;;  %v239_v4 = vadd.f32 1.0, %v614_v0  ;;  %v292_v59 = vld [vmem:[%s715_s19 + $0x60] sm:$0xff] }
  0x28   : > { %323 = vperm.xlu0 %579, %v612_v61   ;;  %v618_v3 = vpop.eup %617  ;;  %637 = vrcp.f32 %v237_v63 }
  0x29   : > { %v620_v5 = vpop.eup %619  ;;  %639 = vrcp.f32 %v236_v1 }
  0x2a   : > { %v622_v6 = vpop.eup %621  ;;  %641 = vrcp.f32 %v239_v4  ;;  %v299_v4 = vld [vmem:[%s715_s19 + $0x98] sm:$0xff] }
  0x2b   : > { %343 = vperm.xlu1 %580, %v616_v2   ;;  %v624_v7 = vpop.eup %623 }
  0x2c   : > { %338 = vperm.xlu0 %579, %v618_v3   ;;  %v626_v8 = vpop.eup %625  ;;  %v298_v3 = vld [vmem:[%s715_s19 + $0x90] sm:$0xff] }
  0x2d   : > { %v628_v9 = vpop.eup %627 }
  0x2e   : > { %v630_v10 = vpop.eup %629  ;;  %v238_v11 = vadd.f32 1.0, %v628_v9 }
  0x2f   : > { %353 = vperm.xlu1 %580, %v620_v5   ;;  %v632_v12 = vpop.eup %631  ;;  %v241_v13 = vadd.f32 1.0, %v630_v10  ;;  %v296_v5 = vld [vmem:[%s715_s19 + $0x80] sm:$0xff] }
  0x30   : > { %348 = vperm.xlu0 %579, %v622_v6   ;;  %v634_v14 = vpop.eup %633  ;;  %643 = vrcp.f32 %v238_v11  ;;  %v240_v15 = vadd.f32 1.0, %v632_v12  ;;  %v297_v6 = vld [vmem:[%s715_s19 + $0x88] sm:$0xff] }
  0x31   : > { %v636_v16 = vpop.eup %635  ;;  %645 = vrcp.f32 %v241_v13  ;;  %v243_v17 = vadd.f32 1.0, %v634_v14  ;;  %v302_v13 = vld [vmem:[%s715_s19 + $0xb0] sm:$0xff]  ;;  %v303_v14 = vld [vmem:[%s715_s19 + $0xb8] sm:$0xff] }
  0x32   : > { %v638_v18 = vpop.eup %637  ;;  %647 = vrcp.f32 %v240_v15  ;;  %v242_v19 = vadd.f32 1.0, %v636_v16  ;;  %v300_v15 = vld [vmem:[%s715_s19 + $0xa0] sm:$0xff]  ;;  %v301_v16 = vld [vmem:[%s715_s19 + $0xa8] sm:$0xff] }
  0x33   : > { %363 = vperm.xlu1 %580, %v624_v7   ;;  %v640_v20 = vpop.eup %639  ;;  %649 = vrcp.f32 %v243_v17 }
  0x34   : > { %358 = vperm.xlu0 %579, %v626_v8   ;;  %v642_v21 = vpop.eup %641  ;;  %651 = vrcp.f32 %v242_v19 }
  0x37   : > { %373 = vperm.xlu1 %580, %v638_v18  }
  0x38   : > { %368 = vperm.xlu0 %579, %v640_v20  }
  0x3a   : > { %v644_v22 = vpop.eup %643 }
  0x3b   : > { %383 = vperm.xlu1 %580, %v642_v21   ;;  %v646_v23 = vpop.eup %645 }
  0x3c   : > { %378 = vperm.xlu0 %579, %v644_v22   ;;  %v648_v24 = vpop.eup %647 }
  0x3d   : > { %v650_v25 = vpop.eup %649 }
  0x3e   : > { %v652_v26 = vpop.eup %651 }
  0x3f   : > { %393 = vperm.xlu1 %580, %v646_v23   ;;  %v306_v23 = vld [vmem:[%s715_s19 + $0xd0] sm:$0xff] }
  0x40   : > { %388 = vperm.xlu0 %579, %v648_v24   ;;  %v307_v24 = vld [vmem:[%s715_s19 + $0xd8] sm:$0xff] }
  0x43   : > { %403 = vperm.xlu1 %580, %v650_v25  }
  0x44   : > { %398 = vperm.xlu0 %579, %v652_v26   ;;  %v304_v26 = vld [vmem:[%s715_s19 + $0xc0] sm:$0xff] }
  0xa2   : > { %v329_v31 = vpop.permute.xlu1 %328 }
  0xa3   : > { %v410_v32 = vmul.f32 %v329_v31, %v284_v27  ;;  %v411_v33 = vmul.f32 %v329_v31, %v285_v28  ;;  %v319_v34 = vpop.permute.xlu0 %318  ;;  %v305_v27 = vld [vmem:[%s715_s19 + $0xc8] sm:$0xff]  ;;  %v310_v31 = vld [vmem:[%s715_s19 + $0xf0] sm:$0xff] }
  0xa4   : > { %v406_v35 = vmul.f32 %v319_v34, %v280_v29  ;;  %v407_v36 = vmul.f32 %v319_v34, %v281_v30 }
  0xa5   : > { %447 = vst [vmem:[%s724_s22 + $0x20] sm:$0xff] %v410_v32  ;;  %448 = vst.msk [vmem:[%s724_s22 + $0x28] sm:$0xff] %vm443_vm0, %v411_v33  ;;  %v311_v32 = vld [vmem:[%s715_s19 + $0xf8] sm:$0xff] }
  0xa6   : > { %442 = vst [vmem:[%s724_s22] sm:$0xff] %v406_v35  ;;  %444 = vst.msk [vmem:[%s724_s22 + $0x8] sm:$0xff] %vm443_vm0, %v407_v36  ;;  %v334_v41 = vpop.permute.xlu1 %333  ;;  %v308_v36 = vld [vmem:[%s715_s19 + $0xe0] sm:$0xff] }
  0xa7   : > { %v412_v42 = vmul.f32 %v334_v41, %v286_v37  ;;  %v413_v43 = vmul.f32 %v334_v41, %v287_v38  ;;  %v324_v44 = vpop.permute.xlu0 %323  ;;  %v309_v37 = vld [vmem:[%s715_s19 + $0xe8] sm:$0xff]  ;;  %v314_v41 = vld [vmem:[%s715_s19 + $0x110] sm:$0xff] }
  0xa8   : > { %v408_v45 = vmul.f32 %v324_v44, %v282_v39  ;;  %v409_v46 = vmul.f32 %v324_v44, %v283_v40 }
  0xa9   : > { %449 = vst [vmem:[%s724_s22 + $0x30] sm:$0xff] %v412_v42  ;;  %450 = vst.msk [vmem:[%s724_s22 + $0x38] sm:$0xff] %vm443_vm0, %v413_v43  ;;  %v315_v42 = vld [vmem:[%s715_s19 + $0x118] sm:$0xff] }
  0xaa   : > { %445 = vst [vmem:[%s724_s22 + $0x10] sm:$0xff] %v408_v45  ;;  %446 = vst.msk [vmem:[%s724_s22 + $0x18] sm:$0xff] %vm443_vm0, %v409_v46  ;;  %v344_v51 = vpop.permute.xlu1 %343  ;;  %v312_v46 = vld [vmem:[%s715_s19 + $0x100] sm:$0xff] }
  0xab   : > { %v416_v52 = vmul.f32 %v344_v51, %v290_v47  ;;  %v417_v53 = vmul.f32 %v344_v51, %v291_v48  ;;  %v339_v54 = vpop.permute.xlu0 %338  ;;  %v313_v47 = vld [vmem:[%s715_s19 + $0x108] sm:$0xff] }
  0xac   : > { %v414_v55 = vmul.f32 %v339_v54, %v288_v49  ;;  %v415_v56 = vmul.f32 %v339_v54, %v289_v50 }
  0xad   : > { %453 = vst [vmem:[%s724_s22 + $0x50] sm:$0xff] %v416_v52  ;;  %454 = vst.msk [vmem:[%s724_s22 + $0x58] sm:$0xff] %vm443_vm0, %v417_v53 }
  0xae   : > { %451 = vst [vmem:[%s724_s22 + $0x40] sm:$0xff] %v414_v55  ;;  %452 = vst.msk [vmem:[%s724_s22 + $0x48] sm:$0xff] %vm443_vm0, %v415_v56  ;;  %v354_v61 = vpop.permute.xlu1 %353 }
  0xaf   : > { %v420_v62 = vmul.f32 %v354_v61, %v294_v57  ;;  %v421_v63 = vmul.f32 %v354_v61, %v295_v58  ;;  %v349_v0 = vpop.permute.xlu0 %348 }
  0xb0   : > { %v418_v1 = vmul.f32 %v349_v0, %v292_v59  ;;  %v419_v2 = vmul.f32 %v349_v0, %v293_v60 }
  0xb1   : > { %457 = vst [vmem:[%s724_s22 + $0x70] sm:$0xff] %v420_v62  ;;  %458 = vst.msk [vmem:[%s724_s22 + $0x78] sm:$0xff] %vm443_vm0, %v421_v63 }
  0xb2   : > { %455 = vst [vmem:[%s724_s22 + $0x60] sm:$0xff] %v418_v1  ;;  %456 = vst.msk [vmem:[%s724_s22 + $0x68] sm:$0xff] %vm443_vm0, %v419_v2  ;;  %v364_v7 = vpop.permute.xlu1 %363 }
  0xb3   : > { %v424_v8 = vmul.f32 %v364_v7, %v298_v3  ;;  %v425_v9 = vmul.f32 %v364_v7, %v299_v4  ;;  %v359_v10 = vpop.permute.xlu0 %358 }
  0xb4   : > { %v422_v11 = vmul.f32 %v359_v10, %v296_v5  ;;  %v423_v12 = vmul.f32 %v359_v10, %v297_v6 }
  0xb5   : > { %461 = vst [vmem:[%s724_s22 + $0x90] sm:$0xff] %v424_v8  ;;  %462 = vst.msk [vmem:[%s724_s22 + $0x98] sm:$0xff] %vm443_vm0, %v425_v9 }
  0xb6   : > { %459 = vst [vmem:[%s724_s22 + $0x80] sm:$0xff] %v422_v11  ;;  %460 = vst.msk [vmem:[%s724_s22 + $0x88] sm:$0xff] %vm443_vm0, %v423_v12  ;;  %v374_v17 = vpop.permute.xlu1 %373 }
  0xb7   : > { %v428_v18 = vmul.f32 %v374_v17, %v302_v13  ;;  %v429_v19 = vmul.f32 %v374_v17, %v303_v14  ;;  %v369_v20 = vpop.permute.xlu0 %368 }
  0xb8   : > { %v426_v21 = vmul.f32 %v369_v20, %v300_v15  ;;  %v427_v22 = vmul.f32 %v369_v20, %v301_v16 }
  0xb9   : > { %465 = vst [vmem:[%s724_s22 + $0xb0] sm:$0xff] %v428_v18  ;;  %466 = vst.msk [vmem:[%s724_s22 + $0xb8] sm:$0xff] %vm443_vm0, %v429_v19 }
  0xba   : > { %463 = vst [vmem:[%s724_s22 + $0xa0] sm:$0xff] %v426_v21  ;;  %464 = vst.msk [vmem:[%s724_s22 + $0xa8] sm:$0xff] %vm443_vm0, %v427_v22  ;;  %v384_v25 = vpop.permute.xlu1 %383 }
  0xbb   : > { %v432_v28 = vmul.f32 %v384_v25, %v306_v23  ;;  %v433_v29 = vmul.f32 %v384_v25, %v307_v24  ;;  %v379_v30 = vpop.permute.xlu0 %378 }
  0xbc   : > { %v430_v33 = vmul.f32 %v379_v30, %v304_v26  ;;  %v431_v34 = vmul.f32 %v379_v30, %v305_v27 }
  0xbd   : > { %469 = vst [vmem:[%s724_s22 + $0xd0] sm:$0xff] %v432_v28  ;;  %470 = vst.msk [vmem:[%s724_s22 + $0xd8] sm:$0xff] %vm443_vm0, %v433_v29 }
  0xbe   : > { %v394_v35 = vpop.permute.xlu1 %393  ;;  %467 = vst [vmem:[%s724_s22 + $0xc0] sm:$0xff] %v430_v33  ;;  %468 = vst.msk [vmem:[%s724_s22 + $0xc8] sm:$0xff] %vm443_vm0, %v431_v34 }
  0xbf   : > { %v436_v38 = vmul.f32 %v394_v35, %v310_v31  ;;  %v437_v39 = vmul.f32 %v394_v35, %v311_v32  ;;  %v389_v40 = vpop.permute.xlu0 %388 }
  0xc0   : > { %v434_v43 = vmul.f32 %v389_v40, %v308_v36  ;;  %v435_v44 = vmul.f32 %v389_v40, %v309_v37 }
  0xc1   : > { %473 = vst [vmem:[%s724_s22 + $0xf0] sm:$0xff] %v436_v38  ;;  %474 = vst.msk [vmem:[%s724_s22 + $0xf8] sm:$0xff] %vm443_vm0, %v437_v39 }
  0xc2   : > { %v404_v45 = vpop.permute.xlu1 %403  ;;  %471 = vst [vmem:[%s724_s22 + $0xe0] sm:$0xff] %v434_v43  ;;  %472 = vst.msk [vmem:[%s724_s22 + $0xe8] sm:$0xff] %vm443_vm0, %v435_v44 }
  0xc3   : > { %v440_v48 = vmul.f32 %v404_v45, %v314_v41  ;;  %v441_v49 = vmul.f32 %v404_v45, %v315_v42  ;;  %v399_v50 = vpop.permute.xlu0 %398 }
  0xc4   : > { %v438_v51 = vmul.f32 %v399_v50, %v312_v46  ;;  %v439_v52 = vmul.f32 %v399_v50, %v313_v47 }
  0xc5   : > { %477 = vst [vmem:[%s724_s22 + $0x110] sm:$0xff] %v440_v48  ;;  %478 = vst.msk [vmem:[%s724_s22 + $0x118] sm:$0xff] %vm443_vm0, %v441_v49 }
  0xc6   : > { %475 = vst [vmem:[%s724_s22 + $0x100] sm:$0xff] %v438_v51  ;;  %476 = vst.msk [vmem:[%s724_s22 + $0x108] sm:$0xff] %vm443_vm0, %v439_v52 }
  0xc7 PF: > { %s12_s9 = sadd.s32 1, %s659_s9  }
  0xc8   : > { %p9_p4 = scmp.ge.s32.totalorder %s12_s9, 6  }
  0xca   :  { %11 = sbr.rel (!%p9_p4) target bundleno = 1 (0x1), region = 59 }

</bundles_post_ra>
